<compile_context>
chip_gen: v5e
topology: v5e:2x2
jax: 0.10.0
libtpu: 0.0.40
codegen_flags: <defaults>
</compile_context>

<pallas_src>
import functools

import jax
import jax.numpy as jnp
from jax.experimental import pallas as pl
from jax.experimental.pallas import tpu as pltpu


def lstm_fc_kernel(T, B, H,
                   x_ref, wih_ref, whh_ref, b_ref, wfc_ref, bfc_ref,
                   out_ref, gx_sc):
    """Single-invocation kernel: full LSTM recurrence + final Linear.

    x_ref:   (T*B, I)   bf16, time-major rows (row t*B + b == x[b, t])
    wih_ref: (I, 4H)    bf16, W_ih^T, gate order [i, f, o, g], g cols x2
    whh_ref: (H, 4H)    bf16, W_hh^T, gate order [i, f, o, g], g cols x2
    b_ref:   (1, 4H)    f32,  b_ih + b_hh, gate order [i, f, o, g], g x2
    wfc_ref: (H, Opad)  bf16, W_fc^T padded to a lane-dense output width
    bfc_ref: (1, Opad)  f32
    out_ref: (B, Opad)  f32
    gx_sc:   (T*B, 4H)  f32 VMEM scratch for the hoisted input projection
    """
    # Hoisted input projection: one MXU matmul over all T*B rows (bf16 in,
    # f32 accumulate) + one bias broadcast, done once instead of per step.
    gx_sc[...] = (jnp.dot(x_ref[...], wih_ref[...],
                          preferred_element_type=jnp.float32)
                  + b_ref[...])

    whh = whh_ref[...]  # bf16, loaded once, stays resident for the recurrence

    def step(t, carry):
        h, c = carry  # f32 state carried in vregs
        # B is a full sublane multiple -> this slice is tile-aligned.
        gates = (gx_sc[pl.ds(t * B, B), :]
                 + jnp.dot(h.astype(jnp.bfloat16), whh,
                           preferred_element_type=jnp.float32))
        # Single sigmoid over all four packed gates [i, f, o, g]; the g
        # columns were pre-scaled by 2 at init, so tanh(x) = 2*sigmoid(2x) - 1
        # comes out of a VPU fma instead of a second EUP launch.
        s = jax.nn.sigmoid(gates)
        i_g = s[:, 0 * H:1 * H]
        f_g = s[:, 1 * H:2 * H]
        o_g = s[:, 2 * H:3 * H]
        g = 2.0 * s[:, 3 * H:4 * H] - 1.0
        c_new = f_g * c + i_g * g
        h_new = o_g * jnp.tanh(c_new)
        return h_new, c_new

    h0 = jnp.zeros((B, H), jnp.float32)
    c0 = jnp.zeros((B, H), jnp.float32)
    # Short, static trip count -> unroll for LLO scheduler visibility.
    h_T, _ = jax.lax.fori_loop(0, T, step, (h0, c0), unroll=True)

    # fc(dropout(lstm_out[:, -1, :])); dropout == identity in eval mode.
    out_ref[...] = (jnp.dot(h_T.astype(jnp.bfloat16), wfc_ref[...],
                            preferred_element_type=jnp.float32)
                    + bfc_ref[...])


@functools.partial(jax.jit, static_argnames=("out_features",))
def lstm_model_forward(x, kp, *, out_features):
    """x: (B, T, I) float32 (batch_first, matching the PyTorch module)."""
    B, T, I = x.shape
    H = kp["whh_t"].shape[0]
    O_pad = kp["wfc_t"].shape[1]

    # Pad the batch to a full sublane (multiple of 8): every per-step tensor
    # in the kernel becomes a clean (8,128)-tile with no masked loads/stores.
    B_pad = max(8, -(-B // 8) * 8)

    # Time-major flattened rows: row t*B_pad + b == x[b, t] (zeros for padded
    # batch rows).  Tiny one-time copy; bf16 halves the x DMA.
    x_p = jnp.pad(x, ((0, B_pad - B), (0, 0), (0, 0)))
    x_rows = jnp.transpose(x_p, (1, 0, 2)).reshape(T * B_pad, I)
    x_rows = x_rows.astype(jnp.bfloat16)

    kernel = functools.partial(lstm_fc_kernel, T, B_pad, H)
    vmem_spec = pl.BlockSpec(memory_space=pltpu.MemorySpace.VMEM)

    out_pad = pl.pallas_call(
        kernel,
        out_shape=jax.ShapeDtypeStruct((B_pad, O_pad), jnp.float32),
        in_specs=[vmem_spec] * 6,
        out_specs=vmem_spec,
        scratch_shapes=[pltpu.VMEM((T * B_pad, 4 * H), jnp.float32)],
        compiler_params=pltpu.CompilerParams(
            vmem_limit_bytes=32 * 1024 * 1024),
    )(x_rows, kp["wih_t"], kp["whh_t"], kp["b"], kp["wfc_t"], kp["bfc"])

    return out_pad[:B, :out_features]


def init_params(key, input_size, hidden_size, output_size):
    """Deterministic init mimicking PyTorch's uniform(-1/sqrt(H), 1/sqrt(H)).

    Returns (kernel_params, ref_params):
      * ref_params: PyTorch layout/gate-order [i, f, g, o], f32 (for the
        pure-JAX reference).
      * kernel_params: kernel packing done once here (not per forward call):
        transposed, gate order [i, f, o, g], fused bias, g-gate columns
        pre-scaled by 2 (tanh-via-sigmoid fold), bf16 MXU operands, fc weight
        padded to a lane-dense 128-multiple output width.
    """
    ks = jax.random.split(key, 6)
    H = hidden_size
    O = output_size
    k = 1.0 / jnp.sqrt(hidden_size)
    u = lambda kk, shape: jax.random.uniform(kk, shape, jnp.float32, -k, k)

    w_ih = u(ks[0], (4 * H, input_size))      # rows: [i, f, g, o]
    w_hh = u(ks[1], (4 * H, H))
    b_ih = u(ks[2], (4 * H,))
    b_hh = u(ks[3], (4 * H,))
    w_fc = jax.random.uniform(ks[4], (O, H), jnp.float32, -k, k)
    b_fc = jax.random.uniform(ks[5], (O,), jnp.float32, -k, k)

    # [i, f, g, o] -> [i, f, o, g] row permutation for the kernel packing.
    perm = jnp.concatenate([jnp.arange(0, H), jnp.arange(H, 2 * H),
                            jnp.arange(3 * H, 4 * H), jnp.arange(2 * H, 3 * H)])
    # Pre-scale the g-gate block by 2: tanh(x) = 2*sigmoid(2x) - 1 exactly.
    gate_scale = jnp.concatenate(
        [jnp.ones((3 * H,), jnp.float32), jnp.full((H,), 2.0, jnp.float32)])

    wih_t = w_ih[perm].T * gate_scale[None, :]          # (I, 4H)
    whh_t = w_hh[perm].T * gate_scale[None, :]          # (H, 4H)
    b = ((b_ih + b_hh)[perm] * gate_scale)[None, :]     # (1, 4H)

    # Lane-dense fc output: pad O -> multiple of 128 (unmasked vst in kernel).
    O_pad = -(-O // 128) * 128
    wfc_p = jnp.pad(w_fc.T, ((0, 0), (0, O_pad - O)))   # (H, O_pad)
    bfc_p = jnp.pad(b_fc, (0, O_pad - O))[None, :]      # (1, O_pad)

    kernel_params = {
        "wih_t": wih_t.astype(jnp.bfloat16),
        "whh_t": whh_t.astype(jnp.bfloat16),
        "b": b,                                          # f32, added post-MXU
        "wfc_t": wfc_p.astype(jnp.bfloat16),
        "bfc": bfc_p,                                    # f32
    }
    ref_params = {
        "w_ih": w_ih, "w_hh": w_hh, "b_ih": b_ih, "b_hh": b_hh,
        "w_fc": w_fc, "b_fc": b_fc,
    }
    return kernel_params, ref_params


def reference_forward(x, rp):
    """Pure-JAX f32 reference of the PyTorch forward (eval mode)."""
    B = x.shape[0]
    H = rp["w_hh"].shape[1]
    w_ih_t = rp["w_ih"].T
    w_hh_t = rp["w_hh"].T
    b = (rp["b_ih"] + rp["b_hh"])[None, :]

    def step(carry, x_t):
        h, c = carry
        gates = x_t @ w_ih_t + h @ w_hh_t + b
        i = jax.nn.sigmoid(gates[:, 0 * H:1 * H])
        f = jax.nn.sigmoid(gates[:, 1 * H:2 * H])
        g = jnp.tanh(gates[:, 2 * H:3 * H])
        o = jax.nn.sigmoid(gates[:, 3 * H:4 * H])
        c = f * c + i * g
        h = o * jnp.tanh(c)
        return (h, c), h

    h0 = jnp.zeros((B, H), jnp.float32)
    (h_T, _), _ = jax.lax.scan(step, (h0, h0), jnp.transpose(x, (1, 0, 2)))
    return h_T @ rp["w_fc"].T + rp["b_fc"][None, :]


if __name__ == "__main__":
    B, T, I, H, O = 2, 8, 16, 32, 4

    key = jax.random.PRNGKey(0)
    k_x, k_p = jax.random.split(key)
    x = jax.random.normal(k_x, (B, T, I), dtype=jnp.float32)
    kernel_params, ref_params = init_params(k_p, I, H, O)

    out = jax.block_until_ready(
        lstm_model_forward(x, kernel_params, out_features=O))
    ref = reference_forward(x, ref_params)

    assert out.shape == (B, O)
    # bf16 MXU operands (f32 accumulation) -> loosened tolerance vs f32 ref.
    assert jnp.allclose(out, ref, atol=5e-2, rtol=5e-2), (out, ref)

    print("KERNEL_OK")
</pallas_src>

<mosaic_0001>
module attributes {stable_mosaic.version = 11 : i64} {
  func.func @lstm_fc_kernel(%arg0: memref<64x16xbf16, #tpu.memory_space<vmem>>, %arg1: memref<16x128xbf16, #tpu.memory_space<vmem>>, %arg2: memref<32x128xbf16, #tpu.memory_space<vmem>>, %arg3: memref<1x128xf32, #tpu.memory_space<vmem>>, %arg4: memref<32x128xbf16, #tpu.memory_space<vmem>>, %arg5: memref<1x128xf32, #tpu.memory_space<vmem>>, %arg6: memref<8x128xf32, #tpu.memory_space<vmem>>, %arg7: memref<64x128xf32, #tpu.memory_space<vmem>>) attributes {dimension_semantics = [], scalar_prefetch = 0 : i64, scratch_operands = 1 : i64, tpu.core_type = #tpu.core_type<tc>} {
    %c0 = arith.constant 0 : index
    %c0_0 = arith.constant 0 : index
    %0 = vector.load %arg0[%c0, %c0_0] : memref<64x16xbf16, #tpu.memory_space<vmem>>, vector<64x16xbf16>
    %c0_1 = arith.constant 0 : index
    %c0_2 = arith.constant 0 : index
    %1 = vector.load %arg1[%c0_1, %c0_2] : memref<16x128xbf16, #tpu.memory_space<vmem>>, vector<16x128xbf16>
    %cst = arith.constant dense<0.000000e+00> : vector<64x128xf32>
    %2 = tpu.matmul %0, %1, %cst {dimension_numbers = #tpu.dot_dimension_numbers<[1], [0], [0], [1], [0, 0, 1, 1], [], []>} : vector<64x16xbf16>, vector<16x128xbf16>, vector<64x128xf32> -> vector<64x128xf32>
    %c0_3 = arith.constant 0 : index
    %c0_4 = arith.constant 0 : index
    %3 = vector.load %arg3[%c0_3, %c0_4] : memref<1x128xf32, #tpu.memory_space<vmem>>, vector<1x128xf32>
    %4 = vector.broadcast %3 : vector<1x128xf32> to vector<64x128xf32>
    %5 = arith.addf %2, %4 : vector<64x128xf32>
    %c0_5 = arith.constant 0 : index
    %c0_6 = arith.constant 0 : index
    %6 = vector.load %arg7[%c0_5, %c0_6] : memref<64x128xf32, #tpu.memory_space<vmem>>, vector<64x128xf32>
    tpu.vector_store %arg7[%c0_5, %c0_6], %5 {strides = array<i32>} : memref<64x128xf32, #tpu.memory_space<vmem>>, vector<64x128xf32>,
    %c0_7 = arith.constant 0 : index
    %c0_8 = arith.constant 0 : index
    %7 = vector.load %arg2[%c0_7, %c0_8] : memref<32x128xbf16, #tpu.memory_space<vmem>>, vector<32x128xbf16>
    %cst_9 = arith.constant 0.000000e+00 : f32
    %8 = vector.broadcast %cst_9 : f32 to vector<8x32xf32>
    %cst_10 = arith.constant 0.000000e+00 : f32
    %9 = vector.broadcast %cst_10 : f32 to vector<8x32xf32>
    %c0_i32 = arith.constant 0 : i32
    %c8_i32 = arith.constant 8 : i32
    %10 = arith.muli %c0_i32, %c8_i32 : i32
    %11 = arith.index_cast %10 : i32 to index
    %c0_11 = arith.constant 0 : index
    %12 = vector.load %arg7[%11, %c0_11] : memref<64x128xf32, #tpu.memory_space<vmem>>, vector<8x128xf32>
    %13 = arith.truncf %8 : vector<8x32xf32> to vector<8x32xbf16>
    %cst_12 = arith.constant dense<0.000000e+00> : vector<8x128xf32>
    %14 = tpu.matmul %13, %7, %cst_12 {dimension_numbers = #tpu.dot_dimension_numbers<[1], [0], [0], [1], [0, 0, 1, 1], [], []>} : vector<8x32xbf16>, vector<32x128xbf16>, vector<8x128xf32> -> vector<8x128xf32>
    %15 = arith.addf %12, %14 : vector<8x128xf32>
    %16 = arith.negf %15 : vector<8x128xf32>
    %17 = math.exp %16 : vector<8x128xf32>
    %cst_13 = arith.constant 1.000000e+00 : f32
    %18 = vector.broadcast %cst_13 : f32 to vector<8x128xf32>
    %19 = arith.addf %18, %17 : vector<8x128xf32>
    %20 = arith.divf %18, %19 : vector<8x128xf32>
    %21 = vector.extract_strided_slice %20 {offsets = [0, 0], sizes = [8, 32], strides = [1, 1]} : vector<8x128xf32> to vector<8x32xf32>
    %22 = vector.extract_strided_slice %20 {offsets = [0, 32], sizes = [8, 32], strides = [1, 1]} : vector<8x128xf32> to vector<8x32xf32>
    %23 = vector.extract_strided_slice %20 {offsets = [0, 64], sizes = [8, 32], strides = [1, 1]} : vector<8x128xf32> to vector<8x32xf32>
    %24 = vector.extract_strided_slice %20 {offsets = [0, 96], sizes = [8, 32], strides = [1, 1]} : vector<8x128xf32> to vector<8x32xf32>
    %cst_14 = arith.constant 2.000000e+00 : f32
    %25 = vector.broadcast %cst_14 : f32 to vector<8x32xf32>
    %26 = arith.mulf %25, %24 : vector<8x32xf32>
    %cst_15 = arith.constant 1.000000e+00 : f32
    %27 = vector.broadcast %cst_15 : f32 to vector<8x32xf32>
    %28 = arith.subf %26, %27 : vector<8x32xf32>
    %29 = arith.mulf %22, %9 : vector<8x32xf32>
    %30 = arith.mulf %21, %28 : vector<8x32xf32>
    %31 = arith.addf %29, %30 : vector<8x32xf32>
    %32 = math.tanh %31 : vector<8x32xf32>
    %33 = arith.mulf %23, %32 : vector<8x32xf32>
    %c1_i32 = arith.constant 1 : i32
    %c8_i32_16 = arith.constant 8 : i32
    %34 = arith.muli %c1_i32, %c8_i32_16 : i32
    %35 = arith.index_cast %34 : i32 to index
    %c0_17 = arith.constant 0 : index
    %36 = vector.load %arg7[%35, %c0_17] : memref<64x128xf32, #tpu.memory_space<vmem>>, vector<8x128xf32>
    %37 = arith.truncf %33 : vector<8x32xf32> to vector<8x32xbf16>
    %cst_18 = arith.constant dense<0.000000e+00> : vector<8x128xf32>
    %38 = tpu.matmul %37, %7, %cst_18 {dimension_numbers = #tpu.dot_dimension_numbers<[1], [0], [0], [1], [0, 0, 1, 1], [], []>} : vector<8x32xbf16>, vector<32x128xbf16>, vector<8x128xf32> -> vector<8x128xf32>
    %39 = arith.addf %36, %38 : vector<8x128xf32>
    %40 = arith.negf %39 : vector<8x128xf32>
    %41 = math.exp %40 : vector<8x128xf32>
    %cst_19 = arith.constant 1.000000e+00 : f32
    %42 = vector.broadcast %cst_19 : f32 to vector<8x128xf32>
    %43 = arith.addf %42, %41 : vector<8x128xf32>
    %44 = arith.divf %42, %43 : vector<8x128xf32>
    %45 = vector.extract_strided_slice %44 {offsets = [0, 0], sizes = [8, 32], strides = [1, 1]} : vector<8x128xf32> to vector<8x32xf32>
    %46 = vector.extract_strided_slice %44 {offsets = [0, 32], sizes = [8, 32], strides = [1, 1]} : vector<8x128xf32> to vector<8x32xf32>
    %47 = vector.extract_strided_slice %44 {offsets = [0, 64], sizes = [8, 32], strides = [1, 1]} : vector<8x128xf32> to vector<8x32xf32>
    %48 = vector.extract_strided_slice %44 {offsets = [0, 96], sizes = [8, 32], strides = [1, 1]} : vector<8x128xf32> to vector<8x32xf32>
    %cst_20 = arith.constant 2.000000e+00 : f32
    %49 = vector.broadcast %cst_20 : f32 to vector<8x32xf32>
    %50 = arith.mulf %49, %48 : vector<8x32xf32>
    %cst_21 = arith.constant 1.000000e+00 : f32
    %51 = vector.broadcast %cst_21 : f32 to vector<8x32xf32>
    %52 = arith.subf %50, %51 : vector<8x32xf32>
    %53 = arith.mulf %46, %31 : vector<8x32xf32>
    %54 = arith.mulf %45, %52 : vector<8x32xf32>
    %55 = arith.addf %53, %54 : vector<8x32xf32>
    %56 = math.tanh %55 : vector<8x32xf32>
    %57 = arith.mulf %47, %56 : vector<8x32xf32>
    %c2_i32 = arith.constant 2 : i32
    %c8_i32_22 = arith.constant 8 : i32
    %58 = arith.muli %c2_i32, %c8_i32_22 : i32
    %59 = arith.index_cast %58 : i32 to index
    %c0_23 = arith.constant 0 : index
    %60 = vector.load %arg7[%59, %c0_23] : memref<64x128xf32, #tpu.memory_space<vmem>>, vector<8x128xf32>
    %61 = arith.truncf %57 : vector<8x32xf32> to vector<8x32xbf16>
    %cst_24 = arith.constant dense<0.000000e+00> : vector<8x128xf32>
    %62 = tpu.matmul %61, %7, %cst_24 {dimension_numbers = #tpu.dot_dimension_numbers<[1], [0], [0], [1], [0, 0, 1, 1], [], []>} : vector<8x32xbf16>, vector<32x128xbf16>, vector<8x128xf32> -> vector<8x128xf32>
    %63 = arith.addf %60, %62 : vector<8x128xf32>
    %64 = arith.negf %63 : vector<8x128xf32>
    %65 = math.exp %64 : vector<8x128xf32>
    %cst_25 = arith.constant 1.000000e+00 : f32
    %66 = vector.broadcast %cst_25 : f32 to vector<8x128xf32>
    %67 = arith.addf %66, %65 : vector<8x128xf32>
    %68 = arith.divf %66, %67 : vector<8x128xf32>
    %69 = vector.extract_strided_slice %68 {offsets = [0, 0], sizes = [8, 32], strides = [1, 1]} : vector<8x128xf32> to vector<8x32xf32>
    %70 = vector.extract_strided_slice %68 {offsets = [0, 32], sizes = [8, 32], strides = [1, 1]} : vector<8x128xf32> to vector<8x32xf32>
    %71 = vector.extract_strided_slice %68 {offsets = [0, 64], sizes = [8, 32], strides = [1, 1]} : vector<8x128xf32> to vector<8x32xf32>
    %72 = vector.extract_strided_slice %68 {offsets = [0, 96], sizes = [8, 32], strides = [1, 1]} : vector<8x128xf32> to vector<8x32xf32>
    %cst_26 = arith.constant 2.000000e+00 : f32
    %73 = vector.broadcast %cst_26 : f32 to vector<8x32xf32>
    %74 = arith.mulf %73, %72 : vector<8x32xf32>
    %cst_27 = arith.constant 1.000000e+00 : f32
    %75 = vector.broadcast %cst_27 : f32 to vector<8x32xf32>
    %76 = arith.subf %74, %75 : vector<8x32xf32>
    %77 = arith.mulf %70, %55 : vector<8x32xf32>
    %78 = arith.mulf %69, %76 : vector<8x32xf32>
    %79 = arith.addf %77, %78 : vector<8x32xf32>
    %80 = math.tanh %79 : vector<8x32xf32>
    %81 = arith.mulf %71, %80 : vector<8x32xf32>
    %c3_i32 = arith.constant 3 : i32
    %c8_i32_28 = arith.constant 8 : i32
    %82 = arith.muli %c3_i32, %c8_i32_28 : i32
    %83 = arith.index_cast %82 : i32 to index
    %c0_29 = arith.constant 0 : index
    %84 = vector.load %arg7[%83, %c0_29] : memref<64x128xf32, #tpu.memory_space<vmem>>, vector<8x128xf32>
    %85 = arith.truncf %81 : vector<8x32xf32> to vector<8x32xbf16>
    %cst_30 = arith.constant dense<0.000000e+00> : vector<8x128xf32>
    %86 = tpu.matmul %85, %7, %cst_30 {dimension_numbers = #tpu.dot_dimension_numbers<[1], [0], [0], [1], [0, 0, 1, 1], [], []>} : vector<8x32xbf16>, vector<32x128xbf16>, vector<8x128xf32> -> vector<8x128xf32>
    %87 = arith.addf %84, %86 : vector<8x128xf32>
    %88 = arith.negf %87 : vector<8x128xf32>
    %89 = math.exp %88 : vector<8x128xf32>
    %cst_31 = arith.constant 1.000000e+00 : f32
    %90 = vector.broadcast %cst_31 : f32 to vector<8x128xf32>
    %91 = arith.addf %90, %89 : vector<8x128xf32>
    %92 = arith.divf %90, %91 : vector<8x128xf32>
    %93 = vector.extract_strided_slice %92 {offsets = [0, 0], sizes = [8, 32], strides = [1, 1]} : vector<8x128xf32> to vector<8x32xf32>
    %94 = vector.extract_strided_slice %92 {offsets = [0, 32], sizes = [8, 32], strides = [1, 1]} : vector<8x128xf32> to vector<8x32xf32>
    %95 = vector.extract_strided_slice %92 {offsets = [0, 64], sizes = [8, 32], strides = [1, 1]} : vector<8x128xf32> to vector<8x32xf32>
    %96 = vector.extract_strided_slice %92 {offsets = [0, 96], sizes = [8, 32], strides = [1, 1]} : vector<8x128xf32> to vector<8x32xf32>
    %cst_32 = arith.constant 2.000000e+00 : f32
    %97 = vector.broadcast %cst_32 : f32 to vector<8x32xf32>
    %98 = arith.mulf %97, %96 : vector<8x32xf32>
    %cst_33 = arith.constant 1.000000e+00 : f32
    %99 = vector.broadcast %cst_33 : f32 to vector<8x32xf32>
    %100 = arith.subf %98, %99 : vector<8x32xf32>
    %101 = arith.mulf %94, %79 : vector<8x32xf32>
    %102 = arith.mulf %93, %100 : vector<8x32xf32>
    %103 = arith.addf %101, %102 : vector<8x32xf32>
    %104 = math.tanh %103 : vector<8x32xf32>
    %105 = arith.mulf %95, %104 : vector<8x32xf32>
    %c4_i32 = arith.constant 4 : i32
    %c8_i32_34 = arith.constant 8 : i32
    %106 = arith.muli %c4_i32, %c8_i32_34 : i32
    %107 = arith.index_cast %106 : i32 to index
    %c0_35 = arith.constant 0 : index
    %108 = vector.load %arg7[%107, %c0_35] : memref<64x128xf32, #tpu.memory_space<vmem>>, vector<8x128xf32>
    %109 = arith.truncf %105 : vector<8x32xf32> to vector<8x32xbf16>
    %cst_36 = arith.constant dense<0.000000e+00> : vector<8x128xf32>
    %110 = tpu.matmul %109, %7, %cst_36 {dimension_numbers = #tpu.dot_dimension_numbers<[1], [0], [0], [1], [0, 0, 1, 1], [], []>} : vector<8x32xbf16>, vector<32x128xbf16>, vector<8x128xf32> -> vector<8x128xf32>
    %111 = arith.addf %108, %110 : vector<8x128xf32>
    %112 = arith.negf %111 : vector<8x128xf32>
    %113 = math.exp %112 : vector<8x128xf32>
    %cst_37 = arith.constant 1.000000e+00 : f32
    %114 = vector.broadcast %cst_37 : f32 to vector<8x128xf32>
    %115 = arith.addf %114, %113 : vector<8x128xf32>
    %116 = arith.divf %114, %115 : vector<8x128xf32>
    %117 = vector.extract_strided_slice %116 {offsets = [0, 0], sizes = [8, 32], strides = [1, 1]} : vector<8x128xf32> to vector<8x32xf32>
    %118 = vector.extract_strided_slice %116 {offsets = [0, 32], sizes = [8, 32], strides = [1, 1]} : vector<8x128xf32> to vector<8x32xf32>
    %119 = vector.extract_strided_slice %116 {offsets = [0, 64], sizes = [8, 32], strides = [1, 1]} : vector<8x128xf32> to vector<8x32xf32>
    %120 = vector.extract_strided_slice %116 {offsets = [0, 96], sizes = [8, 32], strides = [1, 1]} : vector<8x128xf32> to vector<8x32xf32>
    %cst_38 = arith.constant 2.000000e+00 : f32
    %121 = vector.broadcast %cst_38 : f32 to vector<8x32xf32>
    %122 = arith.mulf %121, %120 : vector<8x32xf32>
    %cst_39 = arith.constant 1.000000e+00 : f32
    %123 = vector.broadcast %cst_39 : f32 to vector<8x32xf32>
    %124 = arith.subf %122, %123 : vector<8x32xf32>
    %125 = arith.mulf %118, %103 : vector<8x32xf32>
    %126 = arith.mulf %117, %124 : vector<8x32xf32>
    %127 = arith.addf %125, %126 : vector<8x32xf32>
    %128 = math.tanh %127 : vector<8x32xf32>
    %129 = arith.mulf %119, %128 : vector<8x32xf32>
    %c5_i32 = arith.constant 5 : i32
    %c8_i32_40 = arith.constant 8 : i32
    %130 = arith.muli %c5_i32, %c8_i32_40 : i32
    %131 = arith.index_cast %130 : i32 to index
    %c0_41 = arith.constant 0 : index
    %132 = vector.load %arg7[%131, %c0_41] : memref<64x128xf32, #tpu.memory_space<vmem>>, vector<8x128xf32>
    %133 = arith.truncf %129 : vector<8x32xf32> to vector<8x32xbf16>
    %cst_42 = arith.constant dense<0.000000e+00> : vector<8x128xf32>
    %134 = tpu.matmul %133, %7, %cst_42 {dimension_numbers = #tpu.dot_dimension_numbers<[1], [0], [0], [1], [0, 0, 1, 1], [], []>} : vector<8x32xbf16>, vector<32x128xbf16>, vector<8x128xf32> -> vector<8x128xf32>
    %135 = arith.addf %132, %134 : vector<8x128xf32>
    %136 = arith.negf %135 : vector<8x128xf32>
    %137 = math.exp %136 : vector<8x128xf32>
    %cst_43 = arith.constant 1.000000e+00 : f32
    %138 = vector.broadcast %cst_43 : f32 to vector<8x128xf32>
    %139 = arith.addf %138, %137 : vector<8x128xf32>
    %140 = arith.divf %138, %139 : vector<8x128xf32>
    %141 = vector.extract_strided_slice %140 {offsets = [0, 0], sizes = [8, 32], strides = [1, 1]} : vector<8x128xf32> to vector<8x32xf32>
    %142 = vector.extract_strided_slice %140 {offsets = [0, 32], sizes = [8, 32], strides = [1, 1]} : vector<8x128xf32> to vector<8x32xf32>
    %143 = vector.extract_strided_slice %140 {offsets = [0, 64], sizes = [8, 32], strides = [1, 1]} : vector<8x128xf32> to vector<8x32xf32>
    %144 = vector.extract_strided_slice %140 {offsets = [0, 96], sizes = [8, 32], strides = [1, 1]} : vector<8x128xf32> to vector<8x32xf32>
    %cst_44 = arith.constant 2.000000e+00 : f32
    %145 = vector.broadcast %cst_44 : f32 to vector<8x32xf32>
    %146 = arith.mulf %145, %144 : vector<8x32xf32>
    %cst_45 = arith.constant 1.000000e+00 : f32
    %147 = vector.broadcast %cst_45 : f32 to vector<8x32xf32>
    %148 = arith.subf %146, %147 : vector<8x32xf32>
    %149 = arith.mulf %142, %127 : vector<8x32xf32>
    %150 = arith.mulf %141, %148 : vector<8x32xf32>
    %151 = arith.addf %149, %150 : vector<8x32xf32>
    %152 = math.tanh %151 : vector<8x32xf32>
    %153 = arith.mulf %143, %152 : vector<8x32xf32>
    %c6_i32 = arith.constant 6 : i32
    %c8_i32_46 = arith.constant 8 : i32
    %154 = arith.muli %c6_i32, %c8_i32_46 : i32
    %155 = arith.index_cast %154 : i32 to index
    %c0_47 = arith.constant 0 : index
    %156 = vector.load %arg7[%155, %c0_47] : memref<64x128xf32, #tpu.memory_space<vmem>>, vector<8x128xf32>
    %157 = arith.truncf %153 : vector<8x32xf32> to vector<8x32xbf16>
    %cst_48 = arith.constant dense<0.000000e+00> : vector<8x128xf32>
    %158 = tpu.matmul %157, %7, %cst_48 {dimension_numbers = #tpu.dot_dimension_numbers<[1], [0], [0], [1], [0, 0, 1, 1], [], []>} : vector<8x32xbf16>, vector<32x128xbf16>, vector<8x128xf32> -> vector<8x128xf32>
    %159 = arith.addf %156, %158 : vector<8x128xf32>
    %160 = arith.negf %159 : vector<8x128xf32>
    %161 = math.exp %160 : vector<8x128xf32>
    %cst_49 = arith.constant 1.000000e+00 : f32
    %162 = vector.broadcast %cst_49 : f32 to vector<8x128xf32>
    %163 = arith.addf %162, %161 : vector<8x128xf32>
    %164 = arith.divf %162, %163 : vector<8x128xf32>
    %165 = vector.extract_strided_slice %164 {offsets = [0, 0], sizes = [8, 32], strides = [1, 1]} : vector<8x128xf32> to vector<8x32xf32>
    %166 = vector.extract_strided_slice %164 {offsets = [0, 32], sizes = [8, 32], strides = [1, 1]} : vector<8x128xf32> to vector<8x32xf32>
    %167 = vector.extract_strided_slice %164 {offsets = [0, 64], sizes = [8, 32], strides = [1, 1]} : vector<8x128xf32> to vector<8x32xf32>
    %168 = vector.extract_strided_slice %164 {offsets = [0, 96], sizes = [8, 32], strides = [1, 1]} : vector<8x128xf32> to vector<8x32xf32>
    %cst_50 = arith.constant 2.000000e+00 : f32
    %169 = vector.broadcast %cst_50 : f32 to vector<8x32xf32>
    %170 = arith.mulf %169, %168 : vector<8x32xf32>
    %cst_51 = arith.constant 1.000000e+00 : f32
    %171 = vector.broadcast %cst_51 : f32 to vector<8x32xf32>
    %172 = arith.subf %170, %171 : vector<8x32xf32>
    %173 = arith.mulf %166, %151 : vector<8x32xf32>
    %174 = arith.mulf %165, %172 : vector<8x32xf32>
    %175 = arith.addf %173, %174 : vector<8x32xf32>
    %176 = math.tanh %175 : vector<8x32xf32>
    %177 = arith.mulf %167, %176 : vector<8x32xf32>
    %c7_i32 = arith.constant 7 : i32
    %c8_i32_52 = arith.constant 8 : i32
    %178 = arith.muli %c7_i32, %c8_i32_52 : i32
    %179 = arith.index_cast %178 : i32 to index
    %c0_53 = arith.constant 0 : index
    %180 = vector.load %arg7[%179, %c0_53] : memref<64x128xf32, #tpu.memory_space<vmem>>, vector<8x128xf32>
    %181 = arith.truncf %177 : vector<8x32xf32> to vector<8x32xbf16>
    %cst_54 = arith.constant dense<0.000000e+00> : vector<8x128xf32>
    %182 = tpu.matmul %181, %7, %cst_54 {dimension_numbers = #tpu.dot_dimension_numbers<[1], [0], [0], [1], [0, 0, 1, 1], [], []>} : vector<8x32xbf16>, vector<32x128xbf16>, vector<8x128xf32> -> vector<8x128xf32>
    %183 = arith.addf %180, %182 : vector<8x128xf32>
    %184 = arith.negf %183 : vector<8x128xf32>
    %185 = math.exp %184 : vector<8x128xf32>
    %cst_55 = arith.constant 1.000000e+00 : f32
    %186 = vector.broadcast %cst_55 : f32 to vector<8x128xf32>
    %187 = arith.addf %186, %185 : vector<8x128xf32>
    %188 = arith.divf %186, %187 : vector<8x128xf32>
    %189 = vector.extract_strided_slice %188 {offsets = [0, 0], sizes = [8, 32], strides = [1, 1]} : vector<8x128xf32> to vector<8x32xf32>
    %190 = vector.extract_strided_slice %188 {offsets = [0, 32], sizes = [8, 32], strides = [1, 1]} : vector<8x128xf32> to vector<8x32xf32>
    %191 = vector.extract_strided_slice %188 {offsets = [0, 64], sizes = [8, 32], strides = [1, 1]} : vector<8x128xf32> to vector<8x32xf32>
    %192 = vector.extract_strided_slice %188 {offsets = [0, 96], sizes = [8, 32], strides = [1, 1]} : vector<8x128xf32> to vector<8x32xf32>
    %cst_56 = arith.constant 2.000000e+00 : f32
    %193 = vector.broadcast %cst_56 : f32 to vector<8x32xf32>
    %194 = arith.mulf %193, %192 : vector<8x32xf32>
    %cst_57 = arith.constant 1.000000e+00 : f32
    %195 = vector.broadcast %cst_57 : f32 to vector<8x32xf32>
    %196 = arith.subf %194, %195 : vector<8x32xf32>
    %197 = arith.mulf %190, %175 : vector<8x32xf32>
    %198 = arith.mulf %189, %196 : vector<8x32xf32>
    %199 = arith.addf %197, %198 : vector<8x32xf32>
    %200 = math.tanh %199 : vector<8x32xf32>
    %201 = arith.mulf %191, %200 : vector<8x32xf32>
    %c8_i32_58 = arith.constant 8 : i32
    %202 = arith.truncf %201 : vector<8x32xf32> to vector<8x32xbf16>
    %c0_59 = arith.constant 0 : index
    %c0_60 = arith.constant 0 : index
    %203 = vector.load %arg4[%c0_59, %c0_60] : memref<32x128xbf16, #tpu.memory_space<vmem>>, vector<32x128xbf16>
    %cst_61 = arith.constant dense<0.000000e+00> : vector<8x128xf32>
    %204 = tpu.matmul %202, %203, %cst_61 {dimension_numbers = #tpu.dot_dimension_numbers<[1], [0], [0], [1], [0, 0, 1, 1], [], []>} : vector<8x32xbf16>, vector<32x128xbf16>, vector<8x128xf32> -> vector<8x128xf32>
    %c0_62 = arith.constant 0 : index
    %c0_63 = arith.constant 0 : index
    %205 = vector.load %arg5[%c0_62, %c0_63] : memref<1x128xf32, #tpu.memory_space<vmem>>, vector<1x128xf32>
    %206 = vector.broadcast %205 : vector<1x128xf32> to vector<8x128xf32>
    %207 = arith.addf %204, %206 : vector<8x128xf32>
    %c0_64 = arith.constant 0 : index
    %c0_65 = arith.constant 0 : index
    %208 = vector.load %arg6[%c0_64, %c0_65] : memref<8x128xf32, #tpu.memory_space<vmem>>, vector<8x128xf32>
    tpu.vector_store %arg6[%c0_64, %c0_65], %207 {strides = array<i32>} : memref<8x128xf32, #tpu.memory_space<vmem>>, vector<8x128xf32>,
    return
  }
}

</mosaic_0001>

<bundles_post_ra>
// kernel: lstm_model_forward.1
= control target key start
LH: loop header
LB: loop body
LE: loop exit
PB: predicated region body
PF: predicated region fallthrough
CT: control target
= control target key end

     0   :  { %vm64_vm0 = vcmask 130048   ;;  %v778_v4 = vmov 0   ;;  %s780_s29 = smov 64   ;;  %vm131_vm5 = vcmask 261120   ;;  %s926_s1 = inlined_call_operand.vmem [shape: bf16[16,128], index: 1, kind: input, shape index: {}]   ;;  %s927_s2 = inlined_call_operand.vmem [shape: bf16[32,128], index: 2, kind: input, shape index: {}]   ;;  %s928_s0 = inlined_call_operand.vmem [shape: bf16[64,16], index: 0, kind: input, shape index: {}]   ;;  %s929_s3 = inlined_call_operand.vmem [shape: f32[1,128], index: 3, kind: input, shape index: {}]   ;;  %s930_s4 = inlined_call_operand.vmem [shape: bf16[32,128], index: 4, kind: input, shape index: {}]   ;;  %s931_s5 = inlined_call_operand.vmem [shape: f32[1,128], index: 5, kind: input, shape index: {}]   ;;  %s932_s6 = inlined_call_operand.vmem [shape: f32[8,128], index: 6, kind: output, shape index: {}]  }
   0x1   :  { %v720_v0 = vld [vmem:[%s926_s1] sm:$0xff]  ;;  %v822_v1 = vld [vmem:[%s927_s2 + $0x8] sm:$0xff] }
   0x2   :  { %v716_v2 = vld [vmem:[%s928_s0] sm:$0xff]  ;;  %84 = vmatpush.bf16.msra.mxu0 %v720_v0  ;;  %141 = vmatpush.bf16.msra.mxu1 %v822_v1  ;;  %v717_v62 = vld [vmem:[%s928_s0 + $0x8] sm:$0xff] }
   0x3   :  { %v831_v3 = vld [vmem:[%s927_s2] sm:$0xff]  ;;  %201 = vmatpush.bf16.msra.mxu2 %v822_v1  ;;  %261 = vmatpush.bf16.msra.mxu3 %v822_v1 }
   0x4   :  { %v850_v5 = vld [vmem:[%s929_s3] ss:$0 sm:$0xff]  ;;  %s779_s3 = smov 32  }
   0x5   :  { %672 = vmatmul.msk.bf16.vlgmr.msra.gmra.mxu0 %vm64_vm0, %v716_v2 }
   0x6   :  { %142 = vmatpush.bf16.msra.mxu1 %v831_v3 }
   0x7   :  { %202 = vmatpush.bf16.msra.mxu2 %v831_v3  ;;  %262 = vmatpush.bf16.msra.mxu3 %v831_v3 }
   0x9   :  { %143 = vmatmul.bf16.vlgmr.msra.gmra.mxu1 %v778_v4 }
   0xa   :  { %321 = vmatpush.bf16.msrb.mxu1 %v822_v1 }
   0xb   :  { %381 = vmatpush.bf16.msrb.mxu2 %v822_v1  ;;  %441 = vmatpush.bf16.msrb.mxu3 %v822_v1 }
   0xe   :  { %322 = vmatpush.bf16.msrb.mxu1 %v831_v3 }
   0xf   :  { %382 = vmatpush.bf16.msrb.mxu2 %v831_v3  ;;  %442 = vmatpush.bf16.msrb.mxu3 %v831_v3 }
  0x12   :  { %501 = vmatpush.bf16.msra.mxu1 %v822_v1 }
  0x15   :  { %673 = vmatmul.msk.bf16.gmra.mxu0 %vm64_vm0, %v717_v62 }
  0x16   :  { %502 = vmatpush.bf16.msra.mxu1 %v831_v3 }
  0x82   :  { %v86_v6 = vpop.f32.mrf.mxu0 }
  0x83   :  { %v87_v7 = vadd.f32 %v850_v5, %v86_v6 }
  0x86   :  { %v144_v8 = vpop.f32.mrf.mxu1 }
  0x87   :  { %v148_v9 = vadd.f32 %v144_v8, %v87_v7 }
  0x89   :  { %v684_v10 = vmul.f32 -1.442695, %v148_v9 }
  0x8a   :  { %v88_v36 = vpop.f32.mrf.mxu0 }
  0x8b   :  { %730 = vpow2.f32 %v684_v10  ;;  %v89_v37 = vadd.f32 %v850_v5, %v88_v36 }
  0x8e   :  { %v146_v11 = vpop.f32.mrf.mxu1 }
  0x91   :  { %v731_v12 = vpop.eup %730 }
  0x92   :  { %v152_v13 = vadd.f32 1.0, %v731_v12 }
  0x94   :  { %732 = vrcp.f32 %v152_v13  ;;  %v164_v17 = vand.u32 2147483648, %v152_v13  ;;  %v162_v19 = vand.u32 2147483647, %v152_v13  ;;  %vm158_vm2 = vweird.f32 %v152_v13 }
  0x96   :  { %v165_v21 = vor.u32 1.1754944e-38, %v164_v17  ;;  %vm163_vm4 = vcmp.eq.f32.partialorder %v162_v19, 8.507059e+37 }
  0x9a   :  { %v733_v14 = vpop.eup %732 }
  0x9b   :  { %v154_v15 = vmul.f32 %v733_v14, %v152_v13  ;;  %vm159_vm1 = vweird.f32 %v733_v14 }
  0x9c   :  { %vm160_vm3 = vmor %vm158_vm2, %vm159_vm1 }
  0x9d   :  { %v155_v16 = vsub.f32 1.0, %v154_v15 }
  0x9f   :  { %v156_v18 = vmul.f32 %v733_v14, %v155_v16 }
  0xa1   :  { %v157_v20 = vadd.f32 %v733_v14, %v156_v18 }
  0xa3   :  { %v161_v22 = vsel %vm160_vm3, %v733_v14, %v157_v20 }
  0xa4   :  { %v166_v23 = vsel %vm163_vm4, %v165_v21, %v161_v22 }
  0xa5   :  { %v168_v24 = vmul.f32 2.0, %v166_v23  ;;  %v170_v28 = vmul.f32 0.0, %v166_v23 }
  0xa7   :  { %v685_v25 = vadd.f32 -1.0, %v168_v24 }
  0xa9   :  { %172 = vrot.lane.b32.xlu0 %v685_v25, %s779_s3 }
 0x11b   :  { %v173_v26 = vpop.permute.xlu0 %172 }
 0x11c   :  { %v175_v27 = vmul.f32 %v173_v26, %v166_v23 }
 0x11e   :  { %177 = vrot.lane.b32.xlu0 %v175_v27, %s779_s3 }
 0x190   :  { %v178_v29 = vpop.permute.xlu0 %177 }
 0x191   :  { %v180_v30 = vadd.f32 %v178_v29, %v170_v28 }
 0x193   :  { %734 = vtanh.f32 %v180_v30 }
 0x199   :  { %v735_v31 = vpop.eup %734 }
 0x19a   :  { %183 = vrot.lane.b32.xlu1 %v735_v31, %s779_s3 }
 0x20c   :  { %v184_v32 = vpop.permute.xlu1 %183 }
 0x20d   :  { %v186_v33 = vmul.f32 %v184_v32, %v166_v23 }
 0x20f   :  { %v188_v34 = vpack.c.bf16 %v186_v33, %v186_v33 }
 0x211   :  { %190 = vrot.lane.b32.xlu1 %v188_v34, %s780_s29 }
 0x283   :  { %v191_v35 = vpop.permute.xlu1 %190 }
 0x284   :  { %686 = vmatmul.msk.bf16.vlgmr.msra.gmra.mxu2 %vm131_vm5, %v191_v35 }
 0x285   :  { %561 = vmatpush.bf16.msra.mxu2 %v822_v1 }
 0x289   :  { %562 = vmatpush.bf16.msra.mxu2 %v831_v3  ;;  %v91_v3 = vpop.f32.mrf.mxu0 }
 0x28a   :  { %v92_v4 = vadd.f32 %v850_v5, %v91_v3 }
 0x291   :  { %v93_v34 = vpop.f32.mrf.mxu0 }
 0x292   :  { %v94_v35 = vadd.f32 %v850_v5, %v93_v34 }
 0x307   :  { %v204_v38 = vpop.f32.mrf.mxu2 }
 0x308   :  { %v208_v39 = vadd.f32 %v204_v38, %v89_v37 }
 0x30a   :  { %v687_v40 = vmul.f32 -1.442695, %v208_v39 }
 0x30c   :  { %736 = vpow2.f32 %v687_v40 }
 0x30f   :  { %v206_v41 = vpop.f32.mrf.mxu2 }
 0x312   :  { %v737_v42 = vpop.eup %736 }
 0x313   :  { %v212_v43 = vadd.f32 1.0, %v737_v42 }
 0x315   :  { %738 = vrcp.f32 %v212_v43  ;;  %v224_v47 = vand.u32 2147483648, %v212_v43  ;;  %v222_v49 = vand.u32 2147483647, %v212_v43  ;;  %vm218_vm7 = vweird.f32 %v212_v43 }
 0x317   :  { %v225_v51 = vor.u32 1.1754944e-38, %v224_v47  ;;  %vm223_vm9 = vcmp.eq.f32.partialorder %v222_v49, 8.507059e+37 }
 0x31b   :  { %v739_v44 = vpop.eup %738 }
 0x31c   :  { %v214_v45 = vmul.f32 %v739_v44, %v212_v43  ;;  %vm219_vm6 = vweird.f32 %v739_v44 }
 0x31d   :  { %vm220_vm8 = vmor %vm218_vm7, %vm219_vm6 }
 0x31e   :  { %v215_v46 = vsub.f32 1.0, %v214_v45 }
 0x320   :  { %v216_v48 = vmul.f32 %v739_v44, %v215_v46 }
 0x322   :  { %v217_v50 = vadd.f32 %v739_v44, %v216_v48 }
 0x324   :  { %v221_v52 = vsel %vm220_vm8, %v739_v44, %v217_v50 }
 0x325   :  { %v226_v53 = vsel %vm223_vm9, %v225_v51, %v221_v52 }
 0x326   :  { %v228_v54 = vmul.f32 2.0, %v226_v53  ;;  %v230_v58 = vmul.f32 %v226_v53, %v180_v30 }
 0x328   :  { %v688_v55 = vadd.f32 -1.0, %v228_v54 }
 0x32a   :  { %232 = vrot.lane.b32.xlu2 %v688_v55, %s779_s3 }
 0x384   :  { %v233_v56 = vpop.permute.xlu2 %232 }
 0x385   :  { %v235_v57 = vmul.f32 %v233_v56, %v226_v53 }
 0x387   :  { %237 = vrot.lane.b32.xlu2 %v235_v57, %s779_s3 }
 0x3e1   :  { %v238_v59 = vpop.permute.xlu2 %237 }
 0x3e2   :  { %v240_v60 = vadd.f32 %v238_v59, %v230_v58 }
 0x3e4   :  { %740 = vtanh.f32 %v240_v60 }
 0x3ea   :  { %v741_v61 = vpop.eup %740 }
 0x3eb   :  { %243 = vrot.lane.b32.xlu0 %v741_v61, %s779_s3 }
 0x45d   :  { %v244_v63 = vpop.permute.xlu0 %243 }
 0x45e   :  { %v246_v0 = vmul.f32 %v244_v63, %v226_v53 }
 0x460   :  { %v248_v1 = vpack.c.bf16 %v246_v0, %v246_v0 }
 0x462   :  { %250 = vrot.lane.b32.xlu1 %v248_v1, %s780_s29 }
 0x4d4   :  { %v251_v2 = vpop.permute.xlu1 %250 }
 0x4d5   :  { %689 = vmatmul.msk.bf16.vlgmr.msra.gmra.mxu3 %vm131_vm5, %v251_v2 }
 0x558   :  { %v264_v6 = vpop.f32.mrf.mxu3 }
 0x559   :  { %v268_v7 = vadd.f32 %v264_v6, %v92_v4 }
 0x55b   :  { %v690_v8 = vmul.f32 -1.442695, %v268_v7 }
 0x55d   :  { %742 = vpow2.f32 %v690_v8 }
 0x560   :  { %v266_v9 = vpop.f32.mrf.mxu3 }
 0x563   :  { %v743_v10 = vpop.eup %742 }
 0x564   :  { %v272_v11 = vadd.f32 1.0, %v743_v10 }
 0x566   :  { %744 = vrcp.f32 %v272_v11  ;;  %v284_v15 = vand.u32 2147483648, %v272_v11  ;;  %v282_v17 = vand.u32 2147483647, %v272_v11  ;;  %vm278_vm11 = vweird.f32 %v272_v11 }
 0x568   :  { %v285_v19 = vor.u32 1.1754944e-38, %v284_v15  ;;  %vm283_vm13 = vcmp.eq.f32.partialorder %v282_v17, 8.507059e+37 }
 0x56c   :  { %v745_v12 = vpop.eup %744 }
 0x56d   :  { %v274_v13 = vmul.f32 %v745_v12, %v272_v11  ;;  %vm279_vm10 = vweird.f32 %v745_v12 }
 0x56e   :  { %vm280_vm12 = vmor %vm278_vm11, %vm279_vm10 }
 0x56f   :  { %v275_v14 = vsub.f32 1.0, %v274_v13 }
 0x571   :  { %v276_v16 = vmul.f32 %v745_v12, %v275_v14 }
 0x573   :  { %v277_v18 = vadd.f32 %v745_v12, %v276_v16 }
 0x575   :  { %v281_v20 = vsel %vm280_vm12, %v745_v12, %v277_v18 }
 0x576   :  { %v286_v21 = vsel %vm283_vm13, %v285_v19, %v281_v20 }
 0x577   :  { %v288_v22 = vmul.f32 2.0, %v286_v21  ;;  %v290_v26 = vmul.f32 %v286_v21, %v240_v60  ;;  %v718_v60 = vld [vmem:[%s928_s0 + $0x10] sm:$0xff] }
 0x578   :  { %674 = vmatmul.msk.bf16.gmra.mxu0 %vm64_vm0, %v718_v60 }
 0x579   :  { %v691_v23 = vadd.f32 -1.0, %v288_v22 }
 0x57b   :  { %292 = vrot.lane.b32.xlu2 %v691_v23, %s779_s3 }
 0x5d5   :  { %v293_v24 = vpop.permute.xlu2 %292 }
 0x5d6   :  { %v295_v25 = vmul.f32 %v293_v24, %v286_v21 }
 0x5d8   :  { %297 = vrot.lane.b32.xlu0 %v295_v25, %s779_s3 }
 0x5f5   :  { %v96_v1 = vpop.f32.mrf.mxu0 }
 0x5f6   :  { %v97_v2 = vadd.f32 %v850_v5, %v96_v1 }
 0x64a   :  { %v298_v27 = vpop.permute.xlu0 %297 }
 0x64b   :  { %v300_v28 = vadd.f32 %v298_v27, %v290_v26 }
 0x64d   :  { %746 = vtanh.f32 %v300_v28 }
 0x653   :  { %v747_v29 = vpop.eup %746 }
 0x654   :  { %303 = vrot.lane.b32.xlu1 %v747_v29, %s779_s3 }
 0x6c6   :  { %v304_v30 = vpop.permute.xlu1 %303 }
 0x6c7   :  { %v306_v31 = vmul.f32 %v304_v30, %v286_v21 }
 0x6c9   :  { %v308_v32 = vpack.c.bf16 %v306_v31, %v306_v31 }
 0x6cb   :  { %310 = vrot.lane.b32.xlu2 %v308_v32, %s780_s29  ;;  %v98_v32 = vpop.f32.mrf.mxu0 }
 0x725   :  { %v311_v33 = vpop.permute.xlu2 %310 }
 0x726   :  { %692 = vmatmul.msk.bf16.vlgmr.msrb.gmra.mxu1 %vm131_vm5, %v311_v33  ;;  %v99_v33 = vadd.f32 %v850_v5, %v98_v32 }
 0x7a3   :  { %v324_v36 = vpop.f32.mrf.mxu1 }
 0x7a4   :  { %v328_v37 = vadd.f32 %v324_v36, %v94_v35 }
 0x7a6   :  { %v693_v38 = vmul.f32 -1.442695, %v328_v37 }
 0x7a8   :  { %748 = vpow2.f32 %v693_v38 }
 0x7ab   :  { %v326_v39 = vpop.f32.mrf.mxu1 }
 0x7ae   :  { %v749_v40 = vpop.eup %748 }
 0x7af   :  { %v332_v41 = vadd.f32 1.0, %v749_v40 }
 0x7b1   :  { %750 = vrcp.f32 %v332_v41  ;;  %v344_v45 = vand.u32 2147483648, %v332_v41  ;;  %v342_v47 = vand.u32 2147483647, %v332_v41  ;;  %vm338_vm15 = vweird.f32 %v332_v41 }
 0x7b3   :  { %v345_v49 = vor.u32 1.1754944e-38, %v344_v45  ;;  %vm343_vm2 = vcmp.eq.f32.partialorder %v342_v47, 8.507059e+37 }
 0x7b7   :  { %v751_v42 = vpop.eup %750 }
 0x7b8   :  { %v334_v43 = vmul.f32 %v751_v42, %v332_v41  ;;  %vm339_vm14 = vweird.f32 %v751_v42 }
 0x7b9   :  { %vm340_vm1 = vmor %vm338_vm15, %vm339_vm14 }
 0x7ba   :  { %v335_v44 = vsub.f32 1.0, %v334_v43 }
 0x7bc   :  { %v336_v46 = vmul.f32 %v751_v42, %v335_v44 }
 0x7be   :  { %v337_v48 = vadd.f32 %v751_v42, %v336_v46 }
 0x7c0   :  { %v341_v50 = vsel %vm340_vm1, %v751_v42, %v337_v48 }
 0x7c1   :  { %v346_v51 = vsel %vm343_vm2, %v345_v49, %v341_v50 }
 0x7c2   :  { %v348_v52 = vmul.f32 2.0, %v346_v51  ;;  %v350_v56 = vmul.f32 %v346_v51, %v300_v28 }
 0x7c4   :  { %v694_v53 = vadd.f32 -1.0, %v348_v52 }
 0x7c6   :  { %352 = vrot.lane.b32.xlu0 %v694_v53, %s779_s3 }
 0x838   :  { %v353_v54 = vpop.permute.xlu0 %352 }
 0x839   :  { %v355_v55 = vmul.f32 %v353_v54, %v346_v51 }
 0x83b   :  { %357 = vrot.lane.b32.xlu1 %v355_v55, %s779_s3 }
 0x8ad   :  { %v358_v57 = vpop.permute.xlu1 %357 }
 0x8ae   :  { %v360_v58 = vadd.f32 %v358_v57, %v350_v56 }
 0x8b0   :  { %752 = vtanh.f32 %v360_v58 }
 0x8b6   :  { %v753_v59 = vpop.eup %752 }
 0x8b7   :  { %363 = vrot.lane.b32.xlu2 %v753_v59, %s779_s3 }
 0x911   :  { %v364_v61 = vpop.permute.xlu2 %363 }
 0x912   :  { %v366_v62 = vmul.f32 %v364_v61, %v346_v51 }
 0x914   :  { %v368_v63 = vpack.c.bf16 %v366_v62, %v366_v62 }
 0x916   :  { %370 = vrot.lane.b32.xlu0 %v368_v63, %s780_s29 }
 0x988   :  { %v371_v0 = vpop.permute.xlu0 %370 }
 0x989   :  { %695 = vmatmul.msk.bf16.vlgmr.msrb.gmra.mxu2 %vm131_vm5, %v371_v0 }
 0xa0c   :  { %v384_v3 = vpop.f32.mrf.mxu2 }
 0xa0d   :  { %v388_v4 = vadd.f32 %v384_v3, %v97_v2 }
 0xa0f   :  { %v696_v6 = vmul.f32 -1.442695, %v388_v4 }
 0xa11   :  { %754 = vpow2.f32 %v696_v6 }
 0xa14   :  { %v386_v7 = vpop.f32.mrf.mxu2 }
 0xa17   :  { %v755_v8 = vpop.eup %754 }
 0xa18   :  { %v392_v9 = vadd.f32 1.0, %v755_v8 }
 0xa1a   :  { %756 = vrcp.f32 %v392_v9  ;;  %v404_v13 = vand.u32 2147483648, %v392_v9  ;;  %v402_v15 = vand.u32 2147483647, %v392_v9  ;;  %vm398_vm4 = vweird.f32 %v392_v9 }
 0xa1c   :  { %v405_v17 = vor.u32 1.1754944e-38, %v404_v13  ;;  %vm403_vm7 = vcmp.eq.f32.partialorder %v402_v15, 8.507059e+37 }
 0xa20   :  { %v757_v10 = vpop.eup %756 }
 0xa21   :  { %v394_v11 = vmul.f32 %v757_v10, %v392_v9  ;;  %vm399_vm3 = vweird.f32 %v757_v10 }
 0xa22   :  { %vm400_vm6 = vmor %vm398_vm4, %vm399_vm3 }
 0xa23   :  { %v395_v12 = vsub.f32 1.0, %v394_v11 }
 0xa25   :  { %v396_v14 = vmul.f32 %v757_v10, %v395_v12 }
 0xa27   :  { %v397_v16 = vadd.f32 %v757_v10, %v396_v14 }
 0xa29   :  { %v401_v18 = vsel %vm400_vm6, %v757_v10, %v397_v16 }
 0xa2a   :  { %v406_v19 = vsel %vm403_vm7, %v405_v17, %v401_v18 }
 0xa2b   :  { %v408_v20 = vmul.f32 2.0, %v406_v19  ;;  %v410_v24 = vmul.f32 %v406_v19, %v360_v58  ;;  %v719_v58 = vld [vmem:[%s928_s0 + $0x18] sm:$0xff] }
 0xa2c   :  { %675 = vmatmul.msk.bf16.gmra.mxu0 %vm64_vm0, %v719_v58 }
 0xa2d   :  { %v697_v21 = vadd.f32 -1.0, %v408_v20 }
 0xa2f   :  { %412 = vrot.lane.b32.xlu1 %v697_v21, %s779_s3 }
 0xaa1   :  { %v413_v22 = vpop.permute.xlu1 %412 }
 0xaa2   :  { %v415_v23 = vmul.f32 %v413_v22, %v406_v19 }
 0xaa4   :  { %417 = vrot.lane.b32.xlu2 %v415_v23, %s779_s3 }
 0xaa9   :  { %v101_v63 = vpop.f32.mrf.mxu0 }
 0xaaa   :  { %v102_v0 = vadd.f32 %v850_v5, %v101_v63 }
 0xafe   :  { %v418_v25 = vpop.permute.xlu2 %417 }
 0xaff   :  { %v420_v26 = vadd.f32 %v418_v25, %v410_v24 }
 0xb01   :  { %758 = vtanh.f32 %v420_v26 }
 0xb07   :  { %v759_v27 = vpop.eup %758 }
 0xb08   :  { %423 = vrot.lane.b32.xlu0 %v759_v27, %s779_s3 }
 0xb7a   :  { %v424_v28 = vpop.permute.xlu0 %423 }
 0xb7b   :  { %v426_v29 = vmul.f32 %v424_v28, %v406_v19 }
 0xb7d   :  { %v428_v30 = vpack.c.bf16 %v426_v29, %v426_v29 }
 0xb7f   :  { %430 = vrot.lane.b32.xlu1 %v428_v30, %s780_s29  ;;  %v103_v30 = vpop.f32.mrf.mxu0 }
 0xbf1   :  { %v431_v31 = vpop.permute.xlu1 %430 }
 0xbf2   :  { %698 = vmatmul.msk.bf16.vlgmr.msrb.gmra.mxu3 %vm131_vm5, %v431_v31  ;;  %v104_v31 = vadd.f32 %v850_v5, %v103_v30 }
 0xc75   :  { %v444_v34 = vpop.f32.mrf.mxu3 }
 0xc76   :  { %v448_v35 = vadd.f32 %v444_v34, %v99_v33 }
 0xc78   :  { %v699_v36 = vmul.f32 -1.442695, %v448_v35 }
 0xc7a   :  { %760 = vpow2.f32 %v699_v36 }
 0xc7d   :  { %v446_v37 = vpop.f32.mrf.mxu3 }
 0xc80   :  { %v761_v38 = vpop.eup %760 }
 0xc81   :  { %v452_v39 = vadd.f32 1.0, %v761_v38 }
 0xc83   :  { %762 = vrcp.f32 %v452_v39  ;;  %v464_v43 = vand.u32 2147483648, %v452_v39  ;;  %v462_v45 = vand.u32 2147483647, %v452_v39  ;;  %vm458_vm9 = vweird.f32 %v452_v39 }
 0xc85   :  { %v465_v47 = vor.u32 1.1754944e-38, %v464_v43  ;;  %vm463_vm11 = vcmp.eq.f32.partialorder %v462_v45, 8.507059e+37 }
 0xc89   :  { %v763_v40 = vpop.eup %762 }
 0xc8a   :  { %v454_v41 = vmul.f32 %v763_v40, %v452_v39  ;;  %vm459_vm8 = vweird.f32 %v763_v40 }
 0xc8b   :  { %vm460_vm10 = vmor %vm458_vm9, %vm459_vm8 }
 0xc8c   :  { %v455_v42 = vsub.f32 1.0, %v454_v41 }
 0xc8e   :  { %v456_v44 = vmul.f32 %v763_v40, %v455_v42 }
 0xc90   :  { %v457_v46 = vadd.f32 %v763_v40, %v456_v44 }
 0xc92   :  { %v461_v48 = vsel %vm460_vm10, %v763_v40, %v457_v46 }
 0xc93   :  { %v466_v49 = vsel %vm463_vm11, %v465_v47, %v461_v48 }
 0xc94   :  { %v468_v50 = vmul.f32 2.0, %v466_v49  ;;  %v470_v54 = vmul.f32 %v466_v49, %v420_v26 }
 0xc96   :  { %v700_v51 = vadd.f32 -1.0, %v468_v50 }
 0xc98   :  { %472 = vrot.lane.b32.xlu2 %v700_v51, %s779_s3 }
 0xcf2   :  { %v473_v52 = vpop.permute.xlu2 %472 }
 0xcf3   :  { %v475_v53 = vmul.f32 %v473_v52, %v466_v49 }
 0xcf5   :  { %477 = vrot.lane.b32.xlu0 %v475_v53, %s779_s3 }
 0xd67   :  { %v478_v55 = vpop.permute.xlu0 %477 }
 0xd68   :  { %v480_v56 = vadd.f32 %v478_v55, %v470_v54  ;;  %v724_v55 = vld [vmem:[%s930_s4 + $0x8] sm:$0xff] }
 0xd69   :  { %640 = vmatpush.bf16.msra.mxu3 %v724_v55 }
 0xd6a   :  { %764 = vtanh.f32 %v480_v56 }
 0xd70   :  { %v765_v57 = vpop.eup %764 }
 0xd71   :  { %483 = vrot.lane.b32.xlu1 %v765_v57, %s779_s3 }
 0xde3   :  { %v484_v59 = vpop.permute.xlu1 %483 }
 0xde4   :  { %v486_v60 = vmul.f32 %v484_v59, %v466_v49 }
 0xde6   :  { %v488_v61 = vpack.c.bf16 %v486_v60, %v486_v60 }
 0xde8   :  { %490 = vrot.lane.b32.xlu2 %v488_v61, %s780_s29  ;;  %v729_v61 = vld [vmem:[%s931_s5] ss:$0 sm:$0xff] }
 0xe42   :  { %v491_v62 = vpop.permute.xlu2 %490 }
 0xe43   :  { %701 = vmatmul.msk.bf16.vlgmr.msra.gmra.mxu1 %vm131_vm5, %v491_v62 }
 0xec0   :  { %v504_v1 = vpop.f32.mrf.mxu1 }
 0xec1   :  { %v508_v2 = vadd.f32 %v504_v1, %v102_v0 }
 0xec3   :  { %v702_v3 = vmul.f32 -1.442695, %v508_v2 }
 0xec5   :  { %766 = vpow2.f32 %v702_v3 }
 0xec8   :  { %v506_v4 = vpop.f32.mrf.mxu1 }
 0xecb   :  { %v767_v6 = vpop.eup %766 }
 0xecc   :  { %v512_v7 = vadd.f32 1.0, %v767_v6 }
 0xece   :  { %768 = vrcp.f32 %v512_v7  ;;  %v524_v11 = vand.u32 2147483648, %v512_v7  ;;  %v522_v13 = vand.u32 2147483647, %v512_v7  ;;  %vm518_vm12 = vweird.f32 %v512_v7 }
 0xed0   :  { %v525_v15 = vor.u32 1.1754944e-38, %v524_v11  ;;  %vm523_vm14 = vcmp.eq.f32.partialorder %v522_v13, 8.507059e+37 }
 0xed4   :  { %v769_v8 = vpop.eup %768 }
 0xed5   :  { %v514_v9 = vmul.f32 %v769_v8, %v512_v7  ;;  %vm519_vm0 = vweird.f32 %v769_v8 }
 0xed6   :  { %vm520_vm13 = vmor %vm518_vm12, %vm519_vm0 }
 0xed7   :  { %v515_v10 = vsub.f32 1.0, %v514_v9 }
 0xed9   :  { %v516_v12 = vmul.f32 %v769_v8, %v515_v10 }
 0xedb   :  { %v517_v14 = vadd.f32 %v769_v8, %v516_v12 }
 0xedd   :  { %v521_v16 = vsel %vm520_vm13, %v769_v8, %v517_v14 }
 0xede   :  { %v526_v17 = vsel %vm523_vm14, %v525_v15, %v521_v16 }
 0xedf   :  { %v528_v18 = vmul.f32 2.0, %v526_v17  ;;  %v530_v22 = vmul.f32 %v526_v17, %v480_v56  ;;  %v723_v56 = vld [vmem:[%s930_s4] sm:$0xff] }
 0xee0   :  { %641 = vmatpush.bf16.msra.mxu3 %v723_v56 }
 0xee1   :  { %v703_v19 = vadd.f32 -1.0, %v528_v18 }
 0xee3   :  { %532 = vrot.lane.b32.xlu0 %v703_v19, %s779_s3 }
 0xf55   :  { %v533_v20 = vpop.permute.xlu0 %532 }
 0xf56   :  { %v535_v21 = vmul.f32 %v533_v20, %v526_v17 }
 0xf58   :  { %537 = vrot.lane.b32.xlu1 %v535_v21, %s779_s3 }
 0xfca   :  { %v538_v23 = vpop.permute.xlu1 %537 }
 0xfcb   :  { %v540_v24 = vadd.f32 %v538_v23, %v530_v22 }
 0xfcd   :  { %770 = vtanh.f32 %v540_v24 }
 0xfd3   :  { %v771_v25 = vpop.eup %770 }
 0xfd4   :  { %543 = vrot.lane.b32.xlu2 %v771_v25, %s779_s3 }
0x102e   :  { %v544_v26 = vpop.permute.xlu2 %543 }
0x102f   :  { %v546_v27 = vmul.f32 %v544_v26, %v526_v17 }
0x1031   :  { %v548_v28 = vpack.c.bf16 %v546_v27, %v546_v27 }
0x1033   :  { %550 = vrot.lane.b32.xlu0 %v548_v28, %s780_s29 }
0x10a5   :  { %v551_v29 = vpop.permute.xlu0 %550 }
0x10a6   :  { %704 = vmatmul.msk.bf16.vlgmr.msra.gmra.mxu2 %vm131_vm5, %v551_v29 }
0x1129   :  { %v564_v32 = vpop.f32.mrf.mxu2 }
0x112a   :  { %v568_v33 = vadd.f32 %v564_v32, %v104_v31 }
0x112c   :  { %v705_v34 = vmul.f32 -1.442695, %v568_v33 }
0x112e   :  { %772 = vpow2.f32 %v705_v34 }
0x1131   :  { %v566_v35 = vpop.f32.mrf.mxu2 }
0x1134   :  { %v773_v36 = vpop.eup %772 }
0x1135   :  { %v572_v37 = vadd.f32 1.0, %v773_v36 }
0x1137   :  { %774 = vrcp.f32 %v572_v37  ;;  %v584_v41 = vand.u32 2147483648, %v572_v37  ;;  %v582_v43 = vand.u32 2147483647, %v572_v37  ;;  %vm578_vm1 = vweird.f32 %v572_v37 }
0x1139   :  { %v585_v45 = vor.u32 1.1754944e-38, %v584_v41  ;;  %vm583_vm3 = vcmp.eq.f32.partialorder %v582_v43, 8.507059e+37 }
0x113d   :  { %v775_v38 = vpop.eup %774 }
0x113e   :  { %v574_v39 = vmul.f32 %v775_v38, %v572_v37  ;;  %vm579_vm15 = vweird.f32 %v775_v38 }
0x113f   :  { %vm580_vm2 = vmor %vm578_vm1, %vm579_vm15 }
0x1140   :  { %v575_v40 = vsub.f32 1.0, %v574_v39 }
0x1142   :  { %v576_v42 = vmul.f32 %v775_v38, %v575_v40 }
0x1144   :  { %v577_v44 = vadd.f32 %v775_v38, %v576_v42 }
0x1146   :  { %v581_v5 = vsel %vm580_vm2, %v775_v38, %v577_v44 }
0x1147   :  { %v586_v46 = vsel %vm583_vm3, %v585_v45, %v581_v5 }
0x1148   :  { %v588_v47 = vmul.f32 2.0, %v586_v46  ;;  %v590_v51 = vmul.f32 %v586_v46, %v540_v24 }
0x114a   :  { %v706_v48 = vadd.f32 -1.0, %v588_v47 }
0x114c   :  { %592 = vrot.lane.b32.xlu1 %v706_v48, %s779_s3 }
0x11be   :  { %v593_v49 = vpop.permute.xlu1 %592 }
0x11bf   :  { %v595_v50 = vmul.f32 %v593_v49, %v586_v46 }
0x11c1   :  { %597 = vrot.lane.b32.xlu2 %v595_v50, %s779_s3 }
0x121b   :  { %v598_v52 = vpop.permute.xlu2 %597 }
0x121c   :  { %v600_v53 = vadd.f32 %v598_v52, %v590_v51 }
0x121e   :  { %776 = vtanh.f32 %v600_v53 }
0x1224   :  { %v777_v54 = vpop.eup %776 }
0x1225   :  { %603 = vrot.lane.b32.xlu0 %v777_v54, %s779_s3 }
0x1297   :  { %v604_v57 = vpop.permute.xlu0 %603 }
0x1298   :  { %v606_v58 = vmul.f32 %v604_v57, %v586_v46 }
0x129a   :  { %v607_v59 = vpack.c.bf16 %v606_v58, %v606_v58 }
0x129c   :  { %617 = vrot.lane.b32.xlu1 %v607_v59, %s780_s29 }
0x130e   :  { %v618_v60 = vpop.permute.xlu1 %617 }
0x130f   :  { %715 = vmatmul.msk.bf16.vlgmr.msra.gmra.mxu3 %vm131_vm5, %v618_v60 }
0x1392   :  { %v643_v62 = vpop.f32.mrf.mxu3 }
0x1393   :  { %v644_v63 = vadd.f32 %v729_v61, %v643_v62 }
0x1395   :  { %647 = vst [vmem:[%s932_s6] sm:$0xff] %v644_v63 }
0x139a   :  { %v645_v0 = vpop.f32.mrf.mxu3 }

</bundles_post_ra>
